<compile_context>
chip_gen: v7x
topology: tpu7x:2x2x1
jax: 0.10.0
libtpu: 0.0.40
codegen_flags: <defaults>
</compile_context>

<pallas_src>
import jax
import jax.numpy as jnp
from jax.experimental import pallas as pl
from jax.experimental.pallas import tpu as pltpu


def mmtm_kernel(vis_ref, sk_ref, mv_ref, ms_ref,
                wsq_v_ref, wsq_s_ref, bsq_ref,
                wv_ref, bv_ref, ws_ref, bs_ref,
                vis_out_ref, sk_out_ref):
    vis = vis_ref[...]                       # (tm, Dv) f32
    sk = sk_ref[...]                         # (tm, Ds) f32

    # excitation = relu(fc_squeeze(cat(visual, skeleton, dim=-1)))
    # fc_squeeze weight is pre-split on the host, so both operands are
    # zero-cost static views (no sublane-offset slice inside the kernel):
    #   cat(xv, xs) @ W == xv @ W[:Dv] + xs @ W[Dv:]
    e = (jnp.dot(vis, wsq_v_ref[...], preferred_element_type=jnp.float32)
         + jnp.dot(sk, wsq_s_ref[...], preferred_element_type=jnp.float32)
         + bsq_ref[...])
    e = jnp.maximum(e, 0.0)                  # ReLU

    # gates = sigmoid(fc_visual(e)), sigmoid(fc_skeleton(e))
    gate_v = jax.nn.sigmoid(
        jnp.dot(e, wv_ref[...], preferred_element_type=jnp.float32) + bv_ref[...])
    gate_s = jax.nn.sigmoid(
        jnp.dot(e, ws_ref[...], preferred_element_type=jnp.float32) + bs_ref[...])

    # Algebraic collapse of the literal torch broadcast + mean(1):
    #   vis_res[b, c] = gate_v[b, c] * mean_i(visual[i, c])
    # (no (B,B,D) intermediate, no XLU axis-1 reduction in the kernel).
    vis_out_ref[...] = (gate_v * mv_ref[...]).astype(vis_out_ref.dtype)
    sk_out_ref[...] = (gate_s * ms_ref[...]).astype(sk_out_ref.dtype)


def mmtm_forward(visual, skeleton, params, *, block_rows=None):
    B, dv = visual.shape
    _, ds = skeleton.shape
    dim_out = params["b_sq"].shape[-1]

    # Cross-batch column means (the only term coupling rows).  Tiny O(B*D)
    # reduction computed once here so every batch tile of the kernel is
    # independent -> grid axis can be "parallel" (megacore on v7x).
    col_mean_v = jnp.mean(visual, axis=0, keepdims=True)     # (1, Dv)
    col_mean_s = jnp.mean(skeleton, axis=0, keepdims=True)   # (1, Ds)

    # Split fc_squeeze weight on the host (avoids an in-kernel sublane-offset
    # slice that would materialize a VMEM copy when Dv % 8 != 0).
    w_sq_v = params["w_sq"][:dv]                              # (Dv, dim_out)
    w_sq_s = params["w_sq"][dv:]                              # (Ds, dim_out)

    # Batch tiling: pipeline over rows; weights stay resident (index_map is
    # constant across the grid, so they are DMA'd once).
    if block_rows is None:
        block_rows = B if B <= 512 else 512
    tm = block_rows
    grid = (pl.cdiv(B, tm),)

    def full(shape):
        return pl.BlockSpec(shape, lambda i: (0, 0))

    def rows(d):
        return pl.BlockSpec((tm, d), lambda i: (i, 0))

    # Two separate lane-dense outputs (each starts at lane offset 0); the
    # final concat happens outside the kernel.
    vis_res, sk_res = pl.pallas_call(
        mmtm_kernel,
        out_shape=(jax.ShapeDtypeStruct((B, dv), visual.dtype),
                   jax.ShapeDtypeStruct((B, ds), skeleton.dtype)),
        grid=grid,
        in_specs=[rows(dv), rows(ds),
                  full((1, dv)), full((1, ds)),
                  full((dv, dim_out)), full((ds, dim_out)), full((1, dim_out)),
                  full((dim_out, dv)), full((1, dv)),
                  full((dim_out, ds)), full((1, ds))],
        out_specs=(rows(dv), rows(ds)),
        compiler_params=pltpu.CompilerParams(
            dimension_semantics=("parallel",)),
    )(visual, skeleton, col_mean_v, col_mean_s,
      w_sq_v, w_sq_s, params["b_sq"],
      params["w_v"], params["b_v"], params["w_s"], params["b_s"])

    # out = cat((vis_res, sk_res), dim=-1)
    return jnp.concatenate([vis_res, sk_res], axis=-1)


def mmtm_ref(visual, skeleton, p):
    """Pure-JAX literal port of the PyTorch forward (for verification)."""
    x = jnp.concatenate([visual, skeleton], axis=-1)
    e = jax.nn.relu(x @ p["w_sq"] + p["b_sq"][0])
    gv = jax.nn.sigmoid(e @ p["w_v"] + p["b_v"][0])
    gs = jax.nn.sigmoid(e @ p["w_s"] + p["b_s"][0])
    gv_rep = jnp.tile(gv[:, None, :], (1, visual.shape[1], 1))
    gs_rep = jnp.tile(gs[:, None, :], (1, skeleton.shape[1], 1))
    vis_res = (visual * gv_rep).mean(axis=1)   # numpy broadcasting == torch here
    sk_res = (skeleton * gs_rep).mean(axis=1)
    return jnp.concatenate([vis_res, sk_res], axis=-1)


def init_linear(key, fan_in, fan_out):
    # PyTorch nn.Linear default init: U(-1/sqrt(fan_in), 1/sqrt(fan_in)).
    k = 1.0 / (fan_in ** 0.5)
    kw, kb = jax.random.split(key)
    w = jax.random.uniform(kw, (fan_in, fan_out), jnp.float32, -k, k)  # stored as W^T
    b = jax.random.uniform(kb, (1, fan_out), jnp.float32, -k, k)
    return w, b


def init_mmtm_params(key, dim_visual, dim_skeleton, ratio):
    dim = dim_visual + dim_skeleton
    dim_out = int(2 * dim / ratio)
    k1, k2, k3 = jax.random.split(key, 3)
    w_sq, b_sq = init_linear(k1, dim, dim_out)
    w_v, b_v = init_linear(k2, dim_out, dim_visual)
    w_s, b_s = init_linear(k3, dim_out, dim_skeleton)
    return {"w_sq": w_sq, "b_sq": b_sq,
            "w_v": w_v, "b_v": b_v,
            "w_s": w_s, "b_s": b_s}


if __name__ == "__main__":
    # B must equal dim_visual and dim_skeleton for the original torch broadcast.
    B, dim_visual, dim_skeleton, ratio = 8, 8, 8, 4

    key = jax.random.PRNGKey(0)
    kv, ks, kp = jax.random.split(key, 3)
    visual = jax.random.normal(kv, (B, dim_visual), jnp.float32)
    skeleton = jax.random.normal(ks, (B, dim_skeleton), jnp.float32)
    params = init_mmtm_params(kp, dim_visual, dim_skeleton, ratio)

    out = mmtm_forward(visual, skeleton, params)
    out = jax.block_until_ready(out)

    ref = mmtm_ref(visual, skeleton, params)
    assert out.shape == (B, dim_visual + dim_skeleton), out.shape
    assert out.dtype == jnp.float32
    assert jnp.allclose(out, ref, atol=1e-5, rtol=1e-5), (
        f"max abs diff {jnp.max(jnp.abs(out - ref))}")
    print("KERNEL_OK")
</pallas_src>

<mosaic_0001>
module attributes {stable_mosaic.version = 11 : i64} {
  func.func @mmtm_kernel(%arg0: i32, %arg1: memref<8x8xf32, #tpu.memory_space<vmem>>, %arg2: memref<8x8xf32, #tpu.memory_space<vmem>>, %arg3: memref<1x8xf32, #tpu.memory_space<vmem>>, %arg4: memref<1x8xf32, #tpu.memory_space<vmem>>, %arg5: memref<8x8xf32, #tpu.memory_space<vmem>>, %arg6: memref<8x8xf32, #tpu.memory_space<vmem>>, %arg7: memref<1x8xf32, #tpu.memory_space<vmem>>, %arg8: memref<8x8xf32, #tpu.memory_space<vmem>>, %arg9: memref<1x8xf32, #tpu.memory_space<vmem>>, %arg10: memref<8x8xf32, #tpu.memory_space<vmem>>, %arg11: memref<1x8xf32, #tpu.memory_space<vmem>>, %arg12: memref<8x8xf32, #tpu.memory_space<vmem>>, %arg13: memref<8x8xf32, #tpu.memory_space<vmem>>) attributes {dimension_semantics = [#tpu.dimension_semantics<parallel>], iteration_bounds = array<i64: 1>, scalar_prefetch = 0 : i64, scratch_operands = 0 : i64, tpu.core_type = #tpu.core_type<tc>, window_params = [{transform_indices = @transform_0, window_bounds = array<i64: 8, 8>}, {transform_indices = @transform_1, window_bounds = array<i64: 8, 8>}, {pipeline_mode = #tpu.pipeline_mode<synchronous>, transform_indices = @transform_2, window_bounds = array<i64: 1, 8>}, {pipeline_mode = #tpu.pipeline_mode<synchronous>, transform_indices = @transform_3, window_bounds = array<i64: 1, 8>}, {pipeline_mode = #tpu.pipeline_mode<synchronous>, transform_indices = @transform_4, window_bounds = array<i64: 8, 8>}, {pipeline_mode = #tpu.pipeline_mode<synchronous>, transform_indices = @transform_5, window_bounds = array<i64: 8, 8>}, {pipeline_mode = #tpu.pipeline_mode<synchronous>, transform_indices = @transform_6, window_bounds = array<i64: 1, 8>}, {pipeline_mode = #tpu.pipeline_mode<synchronous>, transform_indices = @transform_7, window_bounds = array<i64: 8, 8>}, {pipeline_mode = #tpu.pipeline_mode<synchronous>, transform_indices = @transform_8, window_bounds = array<i64: 1, 8>}, {pipeline_mode = #tpu.pipeline_mode<synchronous>, transform_indices = @transform_9, window_bounds = array<i64: 8, 8>}, {pipeline_mode = #tpu.pipeline_mode<synchronous>, transform_indices = @transform_10, window_bounds = array<i64: 1, 8>}, {transform_indices = @transform_11, window_bounds = array<i64: 8, 8>}, {transform_indices = @transform_12, window_bounds = array<i64: 8, 8>}]} {
    %c0 = arith.constant 0 : index
    %c0_0 = arith.constant 0 : index
    %0 = vector.load %arg1[%c0, %c0_0] : memref<8x8xf32, #tpu.memory_space<vmem>>, vector<8x8xf32>
    %c0_1 = arith.constant 0 : index
    %c0_2 = arith.constant 0 : index
    %1 = vector.load %arg2[%c0_1, %c0_2] : memref<8x8xf32, #tpu.memory_space<vmem>>, vector<8x8xf32>
    %c0_3 = arith.constant 0 : index
    %c0_4 = arith.constant 0 : index
    %2 = vector.load %arg5[%c0_3, %c0_4] : memref<8x8xf32, #tpu.memory_space<vmem>>, vector<8x8xf32>
    %cst = arith.constant dense<0.000000e+00> : vector<8x8xf32>
    %3 = tpu.matmul %0, %2, %cst {dimension_numbers = #tpu.dot_dimension_numbers<[1], [0], [0], [1], [0, 0, 1, 1], [], []>} : vector<8x8xf32>, vector<8x8xf32>, vector<8x8xf32> -> vector<8x8xf32>
    %c0_5 = arith.constant 0 : index
    %c0_6 = arith.constant 0 : index
    %4 = vector.load %arg6[%c0_5, %c0_6] : memref<8x8xf32, #tpu.memory_space<vmem>>, vector<8x8xf32>
    %cst_7 = arith.constant dense<0.000000e+00> : vector<8x8xf32>
    %5 = tpu.matmul %1, %4, %cst_7 {dimension_numbers = #tpu.dot_dimension_numbers<[1], [0], [0], [1], [0, 0, 1, 1], [], []>} : vector<8x8xf32>, vector<8x8xf32>, vector<8x8xf32> -> vector<8x8xf32>
    %6 = arith.addf %3, %5 : vector<8x8xf32>
    %c0_8 = arith.constant 0 : index
    %c0_9 = arith.constant 0 : index
    %7 = vector.load %arg7[%c0_8, %c0_9] : memref<1x8xf32, #tpu.memory_space<vmem>>, vector<1x8xf32>
    %8 = vector.broadcast %7 : vector<1x8xf32> to vector<8x8xf32>
    %9 = arith.addf %6, %8 : vector<8x8xf32>
    %cst_10 = arith.constant 0.000000e+00 : f32
    %10 = vector.broadcast %cst_10 : f32 to vector<8x8xf32>
    %11 = arith.maximumf %9, %10 : vector<8x8xf32>
    %c0_11 = arith.constant 0 : index
    %c0_12 = arith.constant 0 : index
    %12 = vector.load %arg8[%c0_11, %c0_12] : memref<8x8xf32, #tpu.memory_space<vmem>>, vector<8x8xf32>
    %cst_13 = arith.constant dense<0.000000e+00> : vector<8x8xf32>
    %13 = tpu.matmul %11, %12, %cst_13 {dimension_numbers = #tpu.dot_dimension_numbers<[1], [0], [0], [1], [0, 0, 1, 1], [], []>} : vector<8x8xf32>, vector<8x8xf32>, vector<8x8xf32> -> vector<8x8xf32>
    %c0_14 = arith.constant 0 : index
    %c0_15 = arith.constant 0 : index
    %14 = vector.load %arg9[%c0_14, %c0_15] : memref<1x8xf32, #tpu.memory_space<vmem>>, vector<1x8xf32>
    %15 = vector.broadcast %14 : vector<1x8xf32> to vector<8x8xf32>
    %16 = arith.addf %13, %15 : vector<8x8xf32>
    %17 = arith.negf %16 : vector<8x8xf32>
    %18 = math.exp %17 : vector<8x8xf32>
    %cst_16 = arith.constant 1.000000e+00 : f32
    %19 = vector.broadcast %cst_16 : f32 to vector<8x8xf32>
    %20 = arith.addf %19, %18 : vector<8x8xf32>
    %21 = arith.divf %19, %20 : vector<8x8xf32>
    %c0_17 = arith.constant 0 : index
    %c0_18 = arith.constant 0 : index
    %22 = vector.load %arg10[%c0_17, %c0_18] : memref<8x8xf32, #tpu.memory_space<vmem>>, vector<8x8xf32>
    %cst_19 = arith.constant dense<0.000000e+00> : vector<8x8xf32>
    %23 = tpu.matmul %11, %22, %cst_19 {dimension_numbers = #tpu.dot_dimension_numbers<[1], [0], [0], [1], [0, 0, 1, 1], [], []>} : vector<8x8xf32>, vector<8x8xf32>, vector<8x8xf32> -> vector<8x8xf32>
    %c0_20 = arith.constant 0 : index
    %c0_21 = arith.constant 0 : index
    %24 = vector.load %arg11[%c0_20, %c0_21] : memref<1x8xf32, #tpu.memory_space<vmem>>, vector<1x8xf32>
    %25 = vector.broadcast %24 : vector<1x8xf32> to vector<8x8xf32>
    %26 = arith.addf %23, %25 : vector<8x8xf32>
    %27 = arith.negf %26 : vector<8x8xf32>
    %28 = math.exp %27 : vector<8x8xf32>
    %cst_22 = arith.constant 1.000000e+00 : f32
    %29 = vector.broadcast %cst_22 : f32 to vector<8x8xf32>
    %30 = arith.addf %29, %28 : vector<8x8xf32>
    %31 = arith.divf %29, %30 : vector<8x8xf32>
    %c0_23 = arith.constant 0 : index
    %c0_24 = arith.constant 0 : index
    %32 = vector.load %arg3[%c0_23, %c0_24] : memref<1x8xf32, #tpu.memory_space<vmem>>, vector<1x8xf32>
    %33 = vector.broadcast %32 : vector<1x8xf32> to vector<8x8xf32>
    %34 = arith.mulf %21, %33 : vector<8x8xf32>
    %c0_25 = arith.constant 0 : index
    %c0_26 = arith.constant 0 : index
    %35 = vector.load %arg12[%c0_25, %c0_26] : memref<8x8xf32, #tpu.memory_space<vmem>>, vector<8x8xf32>
    tpu.vector_store %arg12[%c0_25, %c0_26], %34 {strides = array<i32>} : memref<8x8xf32, #tpu.memory_space<vmem>>, vector<8x8xf32>,
    %c0_27 = arith.constant 0 : index
    %c0_28 = arith.constant 0 : index
    %36 = vector.load %arg4[%c0_27, %c0_28] : memref<1x8xf32, #tpu.memory_space<vmem>>, vector<1x8xf32>
    %37 = vector.broadcast %36 : vector<1x8xf32> to vector<8x8xf32>
    %38 = arith.mulf %31, %37 : vector<8x8xf32>
    %c0_29 = arith.constant 0 : index
    %c0_30 = arith.constant 0 : index
    %39 = vector.load %arg13[%c0_29, %c0_30] : memref<8x8xf32, #tpu.memory_space<vmem>>, vector<8x8xf32>
    tpu.vector_store %arg13[%c0_29, %c0_30], %38 {strides = array<i32>} : memref<8x8xf32, #tpu.memory_space<vmem>>, vector<8x8xf32>,
    return
  }
  func.func @transform_0(%arg0: i32) -> (i32, i32) {
    %c0_i32 = arith.constant 0 : i32
    %c0_i32_0 = arith.constant 0 : i32
    return %arg0, %c0_i32 : i32, i32
  }
  func.func @transform_1(%arg0: i32) -> (i32, i32) {
    %c0_i32 = arith.constant 0 : i32
    %c0_i32_0 = arith.constant 0 : i32
    return %arg0, %c0_i32 : i32, i32
  }
  func.func @transform_2(%arg0: i32) -> (i32, i32) {
    %c0_i32 = arith.constant 0 : i32
    %c0_i32_0 = arith.constant 0 : i32
    %c0_i32_1 = arith.constant 0 : i32
    return %c0_i32, %c0_i32_0 : i32, i32
  }
  func.func @transform_3(%arg0: i32) -> (i32, i32) {
    %c0_i32 = arith.constant 0 : i32
    %c0_i32_0 = arith.constant 0 : i32
    %c0_i32_1 = arith.constant 0 : i32
    return %c0_i32, %c0_i32_0 : i32, i32
  }
  func.func @transform_4(%arg0: i32) -> (i32, i32) {
    %c0_i32 = arith.constant 0 : i32
    %c0_i32_0 = arith.constant 0 : i32
    %c0_i32_1 = arith.constant 0 : i32
    return %c0_i32, %c0_i32_0 : i32, i32
  }
  func.func @transform_5(%arg0: i32) -> (i32, i32) {
    %c0_i32 = arith.constant 0 : i32
    %c0_i32_0 = arith.constant 0 : i32
    %c0_i32_1 = arith.constant 0 : i32
    return %c0_i32, %c0_i32_0 : i32, i32
  }
  func.func @transform_6(%arg0: i32) -> (i32, i32) {
    %c0_i32 = arith.constant 0 : i32
    %c0_i32_0 = arith.constant 0 : i32
    %c0_i32_1 = arith.constant 0 : i32
    return %c0_i32, %c0_i32_0 : i32, i32
  }
  func.func @transform_7(%arg0: i32) -> (i32, i32) {
    %c0_i32 = arith.constant 0 : i32
    %c0_i32_0 = arith.constant 0 : i32
    %c0_i32_1 = arith.constant 0 : i32
    return %c0_i32, %c0_i32_0 : i32, i32
  }
  func.func @transform_8(%arg0: i32) -> (i32, i32) {
    %c0_i32 = arith.constant 0 : i32
    %c0_i32_0 = arith.constant 0 : i32
    %c0_i32_1 = arith.constant 0 : i32
    return %c0_i32, %c0_i32_0 : i32, i32
  }
  func.func @transform_9(%arg0: i32) -> (i32, i32) {
    %c0_i32 = arith.constant 0 : i32
    %c0_i32_0 = arith.constant 0 : i32
    %c0_i32_1 = arith.constant 0 : i32
    return %c0_i32, %c0_i32_0 : i32, i32
  }
  func.func @transform_10(%arg0: i32) -> (i32, i32) {
    %c0_i32 = arith.constant 0 : i32
    %c0_i32_0 = arith.constant 0 : i32
    %c0_i32_1 = arith.constant 0 : i32
    return %c0_i32, %c0_i32_0 : i32, i32
  }
  func.func @transform_11(%arg0: i32) -> (i32, i32) {
    %c0_i32 = arith.constant 0 : i32
    %c0_i32_0 = arith.constant 0 : i32
    return %arg0, %c0_i32 : i32, i32
  }
  func.func @transform_12(%arg0: i32) -> (i32, i32) {
    %c0_i32 = arith.constant 0 : i32
    %c0_i32_0 = arith.constant 0 : i32
    return %arg0, %c0_i32 : i32, i32
  }
}

</mosaic_0001>

<bundles_post_ra>
// kernel: tpu_custom_call.1
= control target key start
LH: loop header
LB: loop body
LE: loop exit
PB: predicated region body
PF: predicated region fallthrough
CT: control target
= control target key end

     0   :  { %18 = vsyncpa [#allocation3], 0  ;;  %s838_s0 = inlined_call_operand.hbm [shape: f32[8,8], index: 0, kind: input, shape index: {}]   ;;  %s839_s1 = inlined_call_operand.hbm [shape: f32[8,8], index: 1, kind: input, shape index: {}]   ;;  %s840_s2 = inlined_call_operand.vmem [shape: f32[1,8], index: 2, kind: input, shape index: {}]   ;;  %s841_s3 = inlined_call_operand.vmem [shape: f32[1,8], index: 3, kind: input, shape index: {}]   ;;  %s842_s4 = inlined_call_operand.vmem [shape: f32[8,8], index: 4, kind: input, shape index: {}]   ;;  %s843_s5 = inlined_call_operand.vmem [shape: f32[8,8], index: 5, kind: input, shape index: {}]   ;;  %s844_s6 = inlined_call_operand.hbm [shape: f32[1,8], index: 6, kind: input, shape index: {}]   ;;  %s845_s7 = inlined_call_operand.vmem [shape: f32[8,8], index: 7, kind: input, shape index: {}]   ;;  %s846_s8 = inlined_call_operand.hbm [shape: f32[1,8], index: 8, kind: input, shape index: {}]   ;;  %s847_s9 = inlined_call_operand.vmem [shape: f32[8,8], index: 9, kind: input, shape index: {}]   ;;  %s848_s10 = inlined_call_operand.vmem [shape: f32[1,8], index: 10, kind: input, shape index: {}]   ;;  %s849_s11 = inlined_call_operand.hbm [shape: f32[8,8], index: 11, kind: output, shape index: {0}]   ;;  %s850_s12 = inlined_call_operand.hbm [shape: f32[8,8], index: 12, kind: output, shape index: {1}]  }
   0x1   :  { %19 = vsyncpa [#allocation6], 0 }
   0x2   :  { %20 = vsyncpa [#allocation9], 0 }
   0x3   :  { %21 = vsyncpa [#allocation4], 0 }
   0x4   :  { %22 = vsyncpa [#allocation12], 0  ;;  %s666_s21 = smov [#allocation5]   ;;  %s667_s23 = smov [#allocation2]  }
   0x5   :  { %s39_s22 = sshll.u32 %s666_s21, 4  ;;  %s29_s24 = sshll.u32 %s667_s23, 4  ;;  %s40_s22 = int_to_ptr.vmem [resolvable:$true] %s39_s22  ;;  %s30_s24 = int_to_ptr.vmem [resolvable:$true] %s29_s24 }
   0x6   :  { %s524_s27 = scalar_lea.hbm %s839_s1, 128 }
   0x7   :  { %p525_p0 = scmp.ne.s32.totalorder %s839_s1, %s524_s27  ;;  %p528_p1 = scmp.lt.u32.totalorder %s524_s27, %s839_s1 }
   0x9   :  { %p530_p2 = pnand %p528_p1, %p525_p0 }
   0xb   :  { %533 = shalt.err (!%p530_p2)
}
   0xc   :  { %s534_s14 = scalar_lea.vmem %s40_s22, 128  ;;  %p539_p4 = scmp.lt.s32.totalorder %s40_s22, %s40_s22 }
   0xd   :  { %p535_p3 = scmp.ne.s32.totalorder %s40_s22, %s534_s14  ;;  %p540_p5 = scmp.lt.s32.totalorder %s534_s14, %s534_s14 }
   0xf   :  { %p541_p6 = por %p540_p5, %p539_p4 }
  0x11   :  { %p542_p7 = pnand %p541_p6, %p535_p3 }
  0x13   :  { %545 = shalt.err (!%p542_p7)
}
  0x14   :  { %42 = dma.hbm_to_vmem [thread:$0]  %s839_s1, 128, %s40_s22, [#allocation6]  }
  0x15   :  { %s546_s19 = scalar_lea.hbm %s838_s0, 128 }
  0x16   :  { %p547_p8 = scmp.ne.s32.totalorder %s838_s0, %s546_s19  ;;  %p550_p9 = scmp.lt.u32.totalorder %s546_s19, %s838_s0 }
  0x18   :  { %p552_p10 = pnand %p550_p9, %p547_p8 }
  0x1a   :  { %555 = shalt.err (!%p552_p10)
}
  0x1b   :  { %s556_s26 = scalar_lea.vmem %s30_s24, 128  ;;  %p561_p12 = scmp.lt.s32.totalorder %s30_s24, %s30_s24 }
  0x1c   :  { %p557_p11 = scmp.ne.s32.totalorder %s30_s24, %s556_s26  ;;  %p562_p13 = scmp.lt.s32.totalorder %s556_s26, %s556_s26 }
  0x1e   :  { %p563_p0 = por %p562_p13, %p561_p12 }
  0x20   :  { %p564_p1 = pnand %p563_p0, %p557_p11 }
  0x22   :  { %567 = shalt.err (!%p564_p1)
}
  0x23   :  { %32 = dma.hbm_to_vmem [thread:$0]  %s838_s0, 128, %s30_s24, [#allocation3]  }
  0x24   :  { %s668_s27 = smov [#allocation7]   ;;  %s669_s29 = smov [#allocation8]  }
  0x25   :  { %s57_s28 = sshll.u32 %s668_s27, 4  ;;  %s69_s30 = sshll.u32 %s669_s29, 4  ;;  %s58_s28 = int_to_ptr.vmem [resolvable:$true] %s57_s28  ;;  %s70_s30 = int_to_ptr.vmem [resolvable:$true] %s69_s30 }
  0x26   :  { %s568_s15 = scalar_lea.hbm %s844_s6, 16 }
  0x27   :  { %p569_p2 = scmp.ne.s32.totalorder %s844_s6, %s568_s15  ;;  %p572_p3 = scmp.lt.u32.totalorder %s568_s15, %s844_s6 }
  0x29   :  { %p574_p4 = pnand %p572_p3, %p569_p2 }
  0x2b   :  { %577 = shalt.err (!%p574_p4)
}
  0x2c   :  { %s578_s0 = scalar_lea.vmem %s58_s28, 16  ;;  %s582_s24 = scalar_lea.vmem %s58_s28, 32 }
  0x2d   :  { %p579_p5 = scmp.ne.s32.totalorder %s58_s28, %s578_s0  ;;  %p583_p6 = scmp.lt.s32.totalorder %s58_s28, %s58_s28 }
  0x2e   :  { %p584_p7 = scmp.lt.s32.totalorder %s582_s24, %s578_s0 }
  0x30   :  { %p585_p8 = por %p584_p7, %p583_p6 }
  0x32   :  { %p586_p9 = pnand %p585_p8, %p579_p5 }
  0x34   :  { %589 = shalt.err (!%p586_p9)
}
  0x35   :  { %60 = dma.hbm_to_vmem [thread:$0]  %s844_s6, 16, %s58_s28, [#allocation6]  }
  0x36   :  { %s590_s26 = scalar_lea.hbm %s846_s8, 16 }
  0x37   :  { %p591_p10 = scmp.ne.s32.totalorder %s846_s8, %s590_s26  ;;  %p594_p11 = scmp.lt.u32.totalorder %s590_s26, %s846_s8 }
  0x39   :  { %p596_p12 = pnand %p594_p11, %p591_p10 }
  0x3b   :  { %599 = shalt.err (!%p596_p12)
}
  0x3c   :  { %s600_s13 = scalar_lea.vmem %s70_s30, 16  ;;  %s604_s14 = scalar_lea.vmem %s70_s30, 32 }
  0x3d   :  { %p601_p13 = scmp.ne.s32.totalorder %s70_s30, %s600_s13  ;;  %p605_p0 = scmp.lt.s32.totalorder %s70_s30, %s70_s30 }
  0x3e   :  { %p606_p1 = scmp.lt.s32.totalorder %s604_s14, %s600_s13 }
  0x40   :  { %p607_p2 = por %p606_p1, %p605_p0 }
  0x42   :  { %p608_p3 = pnand %p607_p2, %p601_p13 }
  0x44   :  { %611 = shalt.err (!%p608_p3)
}
  0x45   :  { %72 = dma.hbm_to_vmem [thread:$0]  %s846_s8, 16, %s70_s30, [#allocation9]  }
  0x46   :  { %656 = dma.done.wait [#allocation3], 128  }
  0x47   :  { %657 = vsyncadd [#allocation3], 4294967168 }
  0x48   :  { %658 = dma.done.wait [#allocation6], 144  }
  0x49   :  { %659 = vsyncadd [#allocation6], 4294967152 }
  0x4a   :  { %660 = dma.done.wait [#allocation9], 16  }
  0x4b   :  { %661 = vsyncadd [#allocation9], 4294967280  ;;  %v670_v0 = vmov 0.0   ;;  %vm671_vm0 = vmmov 0   ;;  %vm93_vm1 = vcmask 64512   ;;  %v92_v1 = vld [vmem:[%s843_s5] sm:$0xff] }
  0x4c   :  { %488 = vmatprep.subr.mxu0 %v670_v0  ;;  %493 = vmatprep.subr.mxu1 %v670_v0  ;;  %v91_v2 = vld [vmem:[%s842_s4] sm:$0xff]  ;;  %v90_v3 = vld [vmem:[#allocation5] sm:$0xff]  ;;  %v471_v9 = vld [vmem:[#allocation7] ss:$0 sm:$0xff]  ;;  %s673_s23 = smov [#allocation11]  }
  0x4d   :  { %490 = vmatprep.mubr.msk.f32.mxu0 %vm671_vm0, %v670_v0  ;;  %495 = vmatprep.mubr.msk.f32.mxu1 %vm671_vm0, %v670_v0  ;;  %v89_v4 = vld [vmem:[#allocation2] sm:$0xff]  ;;  %v472_v15 = vld [vmem:[#allocation8] ss:$0 sm:$0xff]  ;;  %s454_s25 = sshll.u32 %s673_s23, 4  ;;  %s455_s25 = int_to_ptr.vmem [resolvable:$true] %s454_s25 }
  0x4e   :  { %489 = vmatpush3.msra.mxu0 %v92_v1  ;;  %494 = vmatpush3.msra.mxu1 %v91_v2  ;;  %v249_v5 = vld [vmem:[%s845_s7] sm:$0xff] }
  0x4f   :  { %491 = vmatmul.mubr.msk.f32.vlgmr.msra.gmra.mrb[0].mxu0 %vm93_vm1, %v90_v3  ;;  %496 = vmatmul.mubr.msk.f32.vlgmr.msra.gmra.mrb[0].mxu1 %vm93_vm1, %v89_v4  ;;  %v336_v6 = vld [vmem:[%s847_s9] sm:$0xff] }
  0x50   :  { %498 = vmatprep.subr.mxu0 %v670_v0  ;;  %503 = vmatprep.subr.mxu1 %v670_v0  ;;  %v475_v16 = vld [vmem:[%s848_s10] ss:$0 sm:$0xff]  ;;  %s672_s10 = smov [#allocation10]  }
  0x51   :  { %500 = vmatprep.mubr.msk.f32.mxu0 %vm671_vm0, %v670_v0  ;;  %505 = vmatprep.mubr.msk.f32.mxu1 %vm671_vm0, %v670_v0  ;;  %v478_v29 = vld [vmem:[%s840_s2] ss:$0 sm:$0xff]  ;;  %s444_s24 = sshll.u32 %s672_s10, 4  ;;  %s445_s24 = int_to_ptr.vmem [resolvable:$true] %s444_s24 }
  0x52   :  { %499 = vmatpush3.msra.mxu0 %v249_v5  ;;  %504 = vmatpush3.msra.mxu1 %v336_v6  ;;  %v479_v30 = vld [vmem:[%s841_s3] ss:$0 sm:$0xff]  ;;  %s612_s26 = scalar_lea.vmem %s445_s24, 128  ;;  %p617_p5 = scmp.lt.s32.totalorder %s445_s24, %s445_s24 }
  0x53   :  { %p613_p4 = scmp.ne.s32.totalorder %s445_s24, %s612_s26  ;;  %p618_p6 = scmp.lt.s32.totalorder %s612_s26, %s612_s26 }
  0x55   :  { %p619_p7 = por %p618_p6, %p617_p5 }
  0x57   :  { %p620_p8 = pnand %p619_p7, %p613_p4 }
 0x122   :  { %v163_v7 = vpop.f32.mrb[0].mxu0  ;;  %v236_v8 = vpop.f32.mrb[0].mxu1 }
 0x123   :  { %v237_v10 = vadd.f32 %v236_v8, %v163_v7  ;;  %v492_v11 = vpop.f32.mrb[1].mxu0  ;;  %v497_v12 = vpop.f32.mrb[1].mxu1 }
 0x125   :  { %v247_v13 = vadd.f32 %v471_v9, %v237_v10 }
 0x127   :  { %v248_v14 = vmax.f32 %v247_v13, 0.0 }
 0x129   :  { %501 = vmatmul.mubr.msk.f32.vlgmr.msra.gmra.mrb[2].mxu0 %vm93_vm1, %v248_v14  ;;  %506 = vmatmul.mubr.msk.f32.vlgmr.msra.gmra.mrb[2].mxu1 %vm93_vm1, %v248_v14 }
 0x1fc   :  { %v326_v17 = vpop.f32.mrb[2].mxu0  ;;  %v410_v18 = vpop.f32.mrb[2].mxu1 }
 0x1fd   :  { %v327_v19 = vadd.f32 %v472_v15, %v326_v17  ;;  %v411_v20 = vadd.f32 %v475_v16, %v410_v18  ;;  %v502_v21 = vpop.f32.mrb[3].mxu0  ;;  %v507_v22 = vpop.f32.mrb[3].mxu1 }
 0x1ff   :  { %v474_v23 = vmul.f32 -1.442695, %v327_v19  ;;  %v477_v24 = vmul.f32 -1.442695, %v411_v20 }
 0x201   :  { %516 = vpow2.f32 %v474_v23 }
 0x202   :  { %518 = vpow2.f32 %v477_v24 }
 0x20b   :  { %v517_v25 = vpop.eup %516 }
 0x20c   :  { %v519_v26 = vpop.eup %518  ;;  %v333_v27 = vadd.f32 1.0, %v517_v25 }
 0x20d   :  { %v417_v28 = vadd.f32 1.0, %v519_v26 }
 0x20e   :  { %520 = vrcp.f32 %v333_v27 }
 0x20f   :  { %522 = vrcp.f32 %v417_v28 }
 0x218   :  { %v521_v31 = vpop.eup %520 }
 0x219   :  { %v523_v32 = vpop.eup %522  ;;  %v427_v33 = vmul.f32 %v521_v31, %v478_v29 }
 0x21a   :  { %v436_v34 = vmul.f32 %v523_v32, %v479_v30 }
 0x21b   :  { %428 = vst.msk [vmem:[#allocation10] sm:$0xff] %vm93_vm1, %v427_v33 }
 0x21c   :  { %623 = shalt.err (!%p620_p8)
}
 0x21d   :  { %s624_s3 = scalar_lea.hbm %s849_s11, 128 }
 0x21e   :  { %p625_p9 = scmp.ne.s32.totalorder %s849_s11, %s624_s3  ;;  %p628_p10 = scmp.lt.u32.totalorder %s624_s3, %s849_s11 }
 0x220   :  { %p630_p11 = pnand %p628_p10, %p625_p9 }
 0x222   :  { %633 = shalt.err (!%p630_p11)
}
 0x223   :  { %447 = dma.vmem_to_hbm [thread:$0]  %s445_s24, 128, %s849_s11, [#allocation4]   ;;  %437 = vst.msk [vmem:[#allocation11] sm:$0xff] %vm93_vm1, %v436_v34 }
 0x224   :  { %s634_s28 = scalar_lea.vmem %s455_s25, 128  ;;  %p639_p13 = scmp.lt.s32.totalorder %s455_s25, %s455_s25 }
 0x225   :  { %p635_p12 = scmp.ne.s32.totalorder %s455_s25, %s634_s28  ;;  %p640_p0 = scmp.lt.s32.totalorder %s634_s28, %s634_s28 }
 0x227   :  { %p641_p1 = por %p640_p0, %p639_p13 }
 0x229   :  { %p642_p2 = pnand %p641_p1, %p635_p12 }
 0x22b   :  { %645 = shalt.err (!%p642_p2)
}
 0x22c   :  { %s646_s17 = scalar_lea.hbm %s850_s12, 128 }
 0x22d   :  { %p647_p3 = scmp.ne.s32.totalorder %s850_s12, %s646_s17  ;;  %p650_p4 = scmp.lt.u32.totalorder %s646_s17, %s850_s12 }
 0x22f   :  { %p652_p5 = pnand %p650_p4, %p647_p3 }
 0x231   :  { %655 = shalt.err (!%p652_p5)
}
 0x232   :  { %457 = dma.vmem_to_hbm [thread:$0]  %s455_s25, 128, %s850_s12, [#allocation12]  }
 0x233   :  { %662 = dma.done.wait [#allocation4], 128  }
 0x234   :  { %663 = vsyncadd [#allocation4], 4294967168 }
 0x235   :  { %664 = dma.done.wait [#allocation12], 128  }
 0x236   :  { %665 = vsyncadd [#allocation12], 4294967168 }
 0x237   :  { %464 = vsyncpa [#allocation3], 1 }
 0x238   :  { %465 = vsyncpa [#allocation6], 1 }
 0x239   :  { %466 = vsyncpa [#allocation9], 1 }
 0x23a   :  { %467 = vsyncpa [#allocation4], 1 }
 0x23b   :  { %468 = vsyncpa [#allocation12], 1 }

</bundles_post_ra>
